<compile_context>
chip_gen: v7x
topology: tpu7x:2x2x1
jax: 0.10.0
libtpu: 0.0.40
codegen_flags: <defaults>
</compile_context>

<pallas_src>
import functools

import jax
import jax.numpy as jnp
from jax.experimental import pallas as pl
from jax.experimental.pallas import tpu as pltpu

_LANE = 128
_SUBLANE = 8
_ACC_ROWS = 32                 # f32 accumulator rows: 4 vregs -> 4 add chains
_MAX_TILE_BYTES = 8 << 20      # per-tile cap; 2x buffers <= 16 MiB < 32 MiB limit


def _abs_pow_sum(x, p):
    """sum(|x|^p) in f32 (plain JAX; used only for the small unaligned tail)."""
    a = jnp.abs(x.astype(jnp.float32))
    if p == 1:
        return jnp.sum(a)
    if p == 2:
        return jnp.sum(a * a)
    if isinstance(p, int):
        acc = a
        for _ in range(int(p) - 1):
            acc = acc * a
        return jnp.sum(acc)
    return jnp.sum(a ** jnp.float32(p))


def _pnorm_sum_kernel(p, acc_rows, x_ref, o_ref, acc_ref):
    """Accumulates sum(|x|^p) of the current tile into a wide VMEM accumulator.

    Grid: (splits, tiles_per_split).  Axis 0 ("parallel") may be sharded
    across TensorCores, so each split owns its own accumulator + output block;
    axis 1 ("arbitrary") is the sequential reduction.
    """
    step = pl.program_id(1)

    @pl.when(step == 0)
    def _():
        acc_ref[...] = jnp.zeros_like(acc_ref)

    # Promote to f32 *after* the load: narrow dtype over HBM, f32 on the VPU
    # (v5e's VPU/EUP have no bf16 path, so this is the right layout there too).
    x = x_ref[...].astype(jnp.float32)
    if p == 1:
        xp = jnp.abs(x)
    elif p == 2:
        xp = x * x
    elif isinstance(p, int):
        a = jnp.abs(x)
        xp = a
        for _ in range(int(p) - 1):   # small-integer p: pure VALU multiplies
            xp = xp * a
    else:
        # TODO(synk): non-integer p lowers to exp(p*log|x|) on the single EUP
        # slot, flipping the kernel from HBM-bound to EUP-bound.
        xp = jnp.abs(x) ** jnp.float32(p)

    tb, lanes = x_ref.shape
    # (tb,128) -> (tb//acc_rows, acc_rows, 128): the axis-0 sum is vreg-wise
    # VPU adds into `acc_rows//8` independent accumulation chains - no XLU
    # work and no single dependent-add chain in the steady state.
    acc_ref[...] += jnp.sum(xp.reshape(tb // acc_rows, acc_rows, lanes), axis=0)

    @pl.when(step == pl.num_programs(1) - 1)
    def _():
        # Collapse the wide accumulator to one lane-dense (8,128) output block;
        # the final scalar reduce + p-th root happen in the wrapper.
        o_ref[...] = jnp.sum(
            acc_ref[...].reshape(acc_rows // _SUBLANE, _SUBLANE, _LANE), axis=0)


def regularization_loss(z, p=1, block_rows=4096):
    """Pallas equivalent of RegularizationLoss.forward: returns z.norm(p)."""
    assert p > 0, "kernel assumes p > 0"
    flat = jnp.ravel(z)                       # contiguous reshape: zero-copy
    n = flat.size
    itemsize = jnp.dtype(flat.dtype).itemsize

    # Rows per tile: scale by 4//itemsize so bytes/DMA are dtype-independent
    # (bf16 -> 2x rows), cap tile bytes for VMEM headroom on all generations.
    target_rows = int(block_rows) * max(1, 4 // max(1, itemsize))
    max_rows = _MAX_TILE_BYTES // (_LANE * itemsize)

    rows = n // _LANE                          # full 128-lane rows available
    tb = min(target_rows, max_rows, rows)
    tb = (tb // _SUBLANE) * _SUBLANE

    total = jnp.float32(0.0)
    main_n = 0
    if tb >= _SUBLANE:
        if tb >= _ACC_ROWS:
            tb = (tb // _ACC_ROWS) * _ACC_ROWS
            acc_rows = _ACC_ROWS
        else:
            acc_rows = _SUBLANE

        n_tiles = rows // tb
        # Leading "parallel" axis -> both TensorCores on v7x; a serial outer
        # loop (no cost) on v5e/v6e.  Only used when it divides evenly so the
        # JAX tail stays bounded by < one tile of rows.
        splits = 2 if (n_tiles >= 2 and n_tiles % 2 == 0) else 1
        tiles_per_split = n_tiles // splits
        main_rows = splits * tiles_per_split * tb
        main_n = main_rows * _LANE

        if n % _LANE == 0:
            x2 = flat.reshape(rows, _LANE)     # pure reshape: no HBM copy
        else:
            # TODO(synk): for numel not a multiple of 128 this prefix slice
            # still costs one bounded copy; a true zero-copy path would need
            # 1-D blocks / manual element-offset DMA.
            x2 = flat[: rows * _LANE].reshape(rows, _LANE)

        kernel = functools.partial(_pnorm_sum_kernel, p, acc_rows)
        partials = pl.pallas_call(
            kernel,
            out_shape=jax.ShapeDtypeStruct((splits * _SUBLANE, _LANE),
                                           jnp.float32),
            grid=(splits, tiles_per_split),
            in_specs=[pl.BlockSpec(
                (tb, _LANE), lambda c, i: (c * tiles_per_split + i, 0))],
            out_specs=pl.BlockSpec((_SUBLANE, _LANE), lambda c, i: (c, 0)),
            scratch_shapes=[pltpu.VMEM((acc_rows, _LANE), jnp.float32)],
            compiler_params=pltpu.CompilerParams(
                dimension_semantics=("parallel", "arbitrary"),
                vmem_limit_bytes=32 * 1024 * 1024,
            ),
        )(x2)
        total = jnp.sum(partials)

    if main_n < n:
        # Remainder (< one tile of rows plus <128 trailing elements): plain
        # JAX - tiny vs. the kernel's HBM pass, and avoids any full-array pad.
        total = total + _abs_pow_sum(flat[main_n:], p)

    if p == 1:
        return total
    if p == 2:
        return jnp.sqrt(total)
    return total ** (1.0 / float(p))


def _reference_norm(z, p=1):
    a = jnp.abs(z.astype(jnp.float32))
    return jnp.sum(a ** p) ** (1.0 / p)


if __name__ == "__main__":
    key = jax.random.PRNGKey(0)
    k1, k2, k3, k4 = jax.random.split(key, 4)

    # 1) Module default: p=1 (L1 norm of a captured feature map), f32,
    #    lane-aligned numel -> fully zero-copy, single grid step.
    z1 = jax.random.normal(k1, (2, 4, 16, 16), dtype=jnp.float32)
    got1 = jax.block_until_ready(regularization_loss(z1, p=1))
    ref1 = _reference_norm(z1, p=1)
    assert jnp.allclose(got1, ref1, rtol=1e-4, atol=1e-4), (got1, ref1)

    # 2) p=2, lane-aligned, small block_rows -> multi-step grid, 2-way
    #    TensorCore split, 32-row (4-vreg) accumulator path.
    z2 = jax.random.normal(k2, (4, 8, 32, 32), dtype=jnp.float32)
    got2 = jax.block_until_ready(regularization_loss(z2, p=2, block_rows=32))
    ref2 = _reference_norm(z2, p=2)
    assert jnp.allclose(got2, ref2, rtol=1e-4, atol=1e-4), (got2, ref2)

    # 3) Ragged numel (not a multiple of 128) + multi-step grid: exercises the
    #    cross-step accumulator and the plain-JAX tail path (no jnp.pad).
    z3 = jax.random.normal(k3, (2, 4, 31, 31), dtype=jnp.float32)
    got3 = jax.block_until_ready(regularization_loss(z3, p=1, block_rows=8))
    ref3 = _reference_norm(z3, p=1)
    assert jnp.allclose(got3, ref3, rtol=1e-4, atol=1e-4), (got3, ref3)

    # 4) bf16 input: shipped bf16 over HBM (2x rows per tile), promoted to f32
    #    inside the kernel.
    z4 = jax.random.normal(k4, (2, 4, 16, 16), dtype=jnp.bfloat16)
    got4 = jax.block_until_ready(regularization_loss(z4, p=1))
    ref4 = _reference_norm(z4, p=1)
    assert jnp.allclose(got4, ref4, rtol=1e-3, atol=1e-3), (got4, ref4)

    print("KERNEL_OK")
</pallas_src>

<mosaic_0001>
module attributes {stable_mosaic.version = 11 : i64} {
  func.func @_pnorm_sum_kernel(%arg0: i32, %arg1: i32, %arg2: memref<16x128xf32, #tpu.memory_space<vmem>>, %arg3: memref<8x128xf32, #tpu.memory_space<vmem>>, %arg4: memref<8x128xf32, #tpu.memory_space<vmem>>) attributes {dimension_semantics = [#tpu.dimension_semantics<parallel>, #tpu.dimension_semantics<arbitrary>], iteration_bounds = array<i64: 1, 1>, scalar_prefetch = 0 : i64, scratch_operands = 1 : i64, tpu.core_type = #tpu.core_type<tc>, window_params = [{transform_indices = @transform_0, window_bounds = array<i64: 16, 128>}, {transform_indices = @transform_1, window_bounds = array<i64: 8, 128>}]} {
    %c0_i32 = arith.constant 0 : i32
    %0 = arith.cmpi eq, %arg1, %c0_i32 : i32
    %1 = arith.extui %0 : i1 to i32
    %c0_i32_0 = arith.constant 0 : i32
    %2 = arith.cmpi ne, %1, %c0_i32_0 : i32
    scf.if %2 {
      %cst_8 = arith.constant 0.000000e+00 : f32
      %13 = vector.broadcast %cst_8 : f32 to vector<8x128xf32>
      %c0_9 = arith.constant 0 : index
      %c0_10 = arith.constant 0 : index
      %14 = vector.load %arg4[%c0_9, %c0_10] : memref<8x128xf32, #tpu.memory_space<vmem>>, vector<8x128xf32>
      tpu.vector_store %arg4[%c0_9, %c0_10], %13 {strides = array<i32>} : memref<8x128xf32, #tpu.memory_space<vmem>>, vector<8x128xf32>,
    } else {
    }
    %c0 = arith.constant 0 : index
    %c0_1 = arith.constant 0 : index
    %3 = vector.load %arg2[%c0, %c0_1] : memref<16x128xf32, #tpu.memory_space<vmem>>, vector<16x128xf32>
    %4 = math.absf %3 : vector<16x128xf32>
    %c0_2 = arith.constant 0 : index
    %c0_3 = arith.constant 0 : index
    %5 = vector.load %arg4[%c0_2, %c0_3] : memref<8x128xf32, #tpu.memory_space<vmem>>, vector<8x128xf32>
    %6 = vector.shape_cast %4 : vector<16x128xf32> to vector<2x8x128xf32>
    %cst = arith.constant dense<0.000000e+00> : vector<8x128xf32>
    %7 = vector.multi_reduction <add>, %6, %cst [0] : vector<2x8x128xf32> to vector<8x128xf32>
    %8 = arith.addf %5, %7 : vector<8x128xf32>
    %c0_4 = arith.constant 0 : index
    %c0_5 = arith.constant 0 : index
    %9 = vector.load %arg4[%c0_4, %c0_5] : memref<8x128xf32, #tpu.memory_space<vmem>>, vector<8x128xf32>
    tpu.vector_store %arg4[%c0_4, %c0_5], %8 {strides = array<i32>} : memref<8x128xf32, #tpu.memory_space<vmem>>, vector<8x128xf32>,
    %c0_i32_6 = arith.constant 0 : i32
    %10 = arith.cmpi eq, %arg1, %c0_i32_6 : i32
    %11 = arith.extui %10 : i1 to i32
    %c0_i32_7 = arith.constant 0 : i32
    %12 = arith.cmpi ne, %11, %c0_i32_7 : i32
    scf.if %12 {
      %c0_8 = arith.constant 0 : index
      %c0_9 = arith.constant 0 : index
      %13 = vector.load %arg4[%c0_8, %c0_9] : memref<8x128xf32, #tpu.memory_space<vmem>>, vector<8x128xf32>
      %14 = vector.shape_cast %13 : vector<8x128xf32> to vector<1x8x128xf32>
      %cst_10 = arith.constant dense<0.000000e+00> : vector<8x128xf32>
      %15 = vector.multi_reduction <add>, %14, %cst_10 [0] : vector<1x8x128xf32> to vector<8x128xf32>
      %c0_11 = arith.constant 0 : index
      %c0_12 = arith.constant 0 : index
      %16 = vector.load %arg3[%c0_11, %c0_12] : memref<8x128xf32, #tpu.memory_space<vmem>>, vector<8x128xf32>
      tpu.vector_store %arg3[%c0_11, %c0_12], %15 {strides = array<i32>} : memref<8x128xf32, #tpu.memory_space<vmem>>, vector<8x128xf32>,
    } else {
    }
    return
  }
  func.func @transform_0(%arg0: i32, %arg1: i32) -> (i32, i32) {
    %c1_i32 = arith.constant 1 : i32
    %0 = arith.muli %arg0, %c1_i32 : i32
    %1 = arith.addi %0, %arg1 : i32
    %c0_i32 = arith.constant 0 : i32
    %c0_i32_0 = arith.constant 0 : i32
    return %1, %c0_i32 : i32, i32
  }
  func.func @transform_1(%arg0: i32, %arg1: i32) -> (i32, i32) {
    %c0_i32 = arith.constant 0 : i32
    %c0_i32_0 = arith.constant 0 : i32
    return %arg0, %c0_i32 : i32, i32
  }
}

</mosaic_0001>

<bundles_post_ra>
// kernel: tpu_custom_call.1
= control target key start
LH: loop header
LB: loop body
LE: loop exit
PB: predicated region body
PF: predicated region fallthrough
CT: control target
= control target key end

     0   :  { %6 = vsyncpa [#allocation4], 0  ;;  %s153_s0 = inlined_call_operand.hbm [shape: f32[16,128], index: 0, kind: input, shape index: {}]   ;;  %s154_s1 = inlined_call_operand.hbm [shape: f32[8,128], index: 1, kind: output, shape index: {}]  }
   0x1   :  { %7 = vsyncpa [#allocation5], 0  ;;  %s115_s6 = smov [#allocation3]   ;;  %s67_s10 = scalar_lea.hbm %s153_s0, 256 }
   0x2   :  { %s17_s7 = sshll.u32 %s115_s6, 4  ;;  %p68_p0 = scmp.ne.s32.totalorder %s153_s0, %s67_s10  ;;  %s18_s7 = int_to_ptr.vmem [resolvable:$true] %s17_s7 }
   0x3   :  { %p71_p1 = scmp.lt.u32.totalorder %s67_s10, %s153_s0 }
   0x5   :  { %p73_p2 = pnand %p71_p1, %p68_p0 }
   0x7   :  { %76 = shalt.err (!%p73_p2)
}
   0x8   :  { %s77_s15 = scalar_lea.vmem %s18_s7, 256  ;;  %p82_p4 = scmp.lt.s32.totalorder %s18_s7, %s18_s7 }
   0x9   :  { %p78_p3 = scmp.ne.s32.totalorder %s18_s7, %s77_s15  ;;  %p83_p5 = scmp.lt.s32.totalorder %s77_s15, %s77_s15 }
   0xb   :  { %p84_p6 = por %p83_p5, %p82_p4 }
   0xd   :  { %p85_p7 = pnand %p84_p6, %p78_p3 }
   0xf   :  { %88 = shalt.err (!%p85_p7)
}
  0x10   :  { %s116_s16 = smov 128   ;;  %s117_s17 = smov 8  }
  0x11   :  { %23 = dma.hbm_to_vmem [thread:$0]  %s153_s0, 256, %s18_s7, [#allocation4], %s116_s16, %s116_s16, %s117_s17  }
  0x12   :  { %111 = dma.done.wait [#allocation4], 256  }
  0x13   :  { %112 = vsyncadd [#allocation4], 4294967040  ;;  %v34_v0 = vld [vmem:[#allocation3] sm:$0xff]  ;;  %v35_v1 = vld [vmem:[#allocation3 + $0x8] sm:$0xff]  ;;  %s118_s20 = smov [#allocation6]  }
  0x14   :  { %s54_s21 = sshll.u32 %s118_s20, 4  ;;  %v36_v2 = vand.u32 2147483647, %v34_v0  ;;  %v37_v3 = vand.u32 2147483647, %v35_v1  ;;  %s55_s21 = int_to_ptr.vmem [resolvable:$true] %s54_s21 }
  0x15   :  { %s89_s22 = scalar_lea.vmem %s55_s21, 128  ;;  %p94_p9 = scmp.lt.s32.totalorder %s55_s21, %s55_s21 }
  0x16   :  { %v39_v4 = vadd.f32 %v37_v3, %v36_v2  ;;  %p90_p8 = scmp.ne.s32.totalorder %s55_s21, %s89_s22  ;;  %p95_p10 = scmp.lt.s32.totalorder %s89_s22, %s89_s22 }
  0x18   :  { %47 = vst [vmem:[#allocation6] sm:$0xff] %v39_v4  ;;  %p96_p11 = por %p95_p10, %p94_p9 }
  0x1a   :  { %p97_p12 = pnand %p96_p11, %p90_p8 }
  0x1c   :  { %100 = shalt.err (!%p97_p12)
}
  0x1d   :  { %s101_s24 = scalar_lea.hbm %s154_s1, 128 }
  0x1e   :  { %p102_p13 = scmp.ne.s32.totalorder %s154_s1, %s101_s24  ;;  %p105_p0 = scmp.lt.u32.totalorder %s101_s24, %s154_s1 }
  0x20   :  { %p107_p1 = pnand %p105_p0, %p102_p13 }
  0x22   :  { %110 = shalt.err (!%p107_p1)
}
  0x23   :  { %57 = dma.vmem_to_hbm [thread:$0]  %s55_s21, 128, %s154_s1, [#allocation5]  }
  0x24   :  { %113 = dma.done.wait [#allocation5], 128  }
  0x25   :  { %114 = vsyncadd [#allocation5], 4294967168 }
  0x26   :  { %61 = vsyncpa [#allocation4], 1 }
  0x27   :  { %62 = vsyncpa [#allocation5], 1 }

</bundles_post_ra>
